<compile_context>
chip_gen: v5e
topology: v5e:2x2
jax: 0.10.0
libtpu: 0.0.40
codegen_flags: <defaults>
</compile_context>

<pallas_src>
import math

import jax
import jax.numpy as jnp
from jax.experimental import pallas as pl
from jax.experimental.pallas import tpu as pltpu

LANE = 128            # TPU lane width: feature dims padded to this (unmasked stores/matmuls)
SUBLANE = 16          # bf16 sublane packing: batch / K dims padded to a multiple of this
MAX_TILE_B = 1024     # rows per grid step once batches get large
SPLIT_THRESHOLD = 512 # above this, use >=2 grid steps (feeds both v7x TensorCores)


def _round_up(n, m):
    return (n + m - 1) // m * m


def qnetwork_kernel(x_ref, w1_ref, b1_ref, w2_ref, b2_ref, w3_ref, b3_ref, out_ref):
    """One batch tile of the full 3-layer MLP.

    All feature dims are padded (S->48, H/A->128), so every MXU pass is unmasked
    and the output store is a full-width vst. x arrives as f32 and is cast to
    bf16 here (no wrapper-side cast/materialization); matmul operands are bf16,
    accumulation is f32; bias add + ReLU stay in f32 (VALU slack is huge here).
    """
    x = x_ref[...].astype(jnp.bfloat16)                                    # [TB, Sp]  bf16
    h1 = jnp.dot(x, w1_ref[...], preferred_element_type=jnp.float32)      # [TB, Hp]  f32
    h1 = jnp.maximum(h1 + b1_ref[...], 0.0)                               # ReLU(fc1)
    h2 = jnp.dot(h1.astype(jnp.bfloat16), w2_ref[...],
                 preferred_element_type=jnp.float32)                      # [TB, Hp]  f32
    h2 = jnp.maximum(h2 + b2_ref[...], 0.0)                               # ReLU(fc2)
    out = jnp.dot(h2.astype(jnp.bfloat16), w3_ref[...],
                  preferred_element_type=jnp.float32)                     # [TB, Ap]  f32
    out_ref[...] = out + b3_ref[...]                                      # fc3, lane-dense store


def qnetwork_forward(x, params):
    """x: [batch, state_size] float32. Returns [batch, action_size] float32 Q-values."""
    w1, b1, w2, b2, w3, b3 = (params["w1"], params["b1"], params["w2"],
                              params["b2"], params["w3"], params["b3"])
    B, S = x.shape
    A = params["action_size"]
    Sp = w1.shape[0]      # padded state dim (48)
    Hp = w1.shape[1]      # padded hidden   (128)
    Ap = w3.shape[1]      # padded action   (128)

    # Batch tiling: pad only to the next multiple of 16, then pick a tile count
    # that (a) keeps tiles <= MAX_TILE_B and (b) gives >=2 "parallel" steps for
    # large batches so both v7x TensorCores are used. No near-2x overshoot.
    b_pad0 = _round_up(max(B, 1), SUBLANE)
    n_tiles = max(pl.cdiv(b_pad0, MAX_TILE_B),
                  2 if b_pad0 >= SPLIT_THRESHOLD else 1)
    tile_b = _round_up(pl.cdiv(b_pad0, n_tiles), SUBLANE)
    b_pad = tile_b * n_tiles

    # Single small f32 pad (batch + feature); the bf16 cast happens in-kernel.
    xp = x
    if b_pad != B or Sp != S:
        xp = jnp.pad(x, ((0, b_pad - B), (0, Sp - S)))

    grid = (n_tiles,)

    # Advisory cost estimate keeps XLA's scheduler honest around this tiny call.
    flops = 2 * b_pad * (Sp * Hp + Hp * Hp + Hp * Ap)
    bytes_accessed = (int(xp.size) * 4
                      + sum(int(p.size) * p.dtype.itemsize
                            for p in (w1, b1, w2, b2, w3, b3))
                      + b_pad * Ap * 4)
    cost = pl.CostEstimate(flops=flops, transcendentals=0,
                           bytes_accessed=bytes_accessed)

    const_spec = lambda arr: pl.BlockSpec(arr.shape, lambda i: (0, 0))  # weights stay VMEM-resident

    out = pl.pallas_call(
        qnetwork_kernel,
        out_shape=jax.ShapeDtypeStruct((b_pad, Ap), jnp.float32),
        grid=grid,
        in_specs=[
            pl.BlockSpec((tile_b, Sp), lambda i: (i, 0)),   # x: tiled over batch, f32
            const_spec(w1), const_spec(b1),
            const_spec(w2), const_spec(b2),
            const_spec(w3), const_spec(b3),
        ],
        out_specs=pl.BlockSpec((tile_b, Ap), lambda i: (i, 0)),
        compiler_params=pltpu.CompilerParams(
            dimension_semantics=("parallel",),
            vmem_limit_bytes=32 * 1024 * 1024),
        cost_estimate=cost,
    )(xp, w1, b1, w2, b2, w3, b3)

    # TODO(synk): for act/learn paths, fuse the consumer (argmax over Q / gather
    # of Q(s,a)) into the kernel to avoid this padded f32 writeback + slice.
    return out[:B, :A]


def init_qnetwork_params(key, state_size, action_size, hidden_size=24):
    """PyTorch nn.Linear default init U(-1/sqrt(fan_in), +1/sqrt(fan_in)) on the
    logical shapes, zero-padded to lane/sublane-aligned [in, out] layouts.
    Weights are bf16 (MXU operands), biases stay f32 (added post-accumulation)."""
    ks = jax.random.split(key, 6)
    sp = _round_up(state_size, SUBLANE)   # 37 -> 48
    hp = _round_up(hidden_size, LANE)     # 24 -> 128
    ap = _round_up(action_size, LANE)     #  4 -> 128

    def linear(kw, kb, fan_in, fan_out, pad_in, pad_out):
        bound = 1.0 / math.sqrt(fan_in)
        w = jax.random.uniform(kw, (fan_in, fan_out), jnp.float32, -bound, bound)
        b = jax.random.uniform(kb, (1, fan_out), jnp.float32, -bound, bound)
        w = jnp.pad(w, ((0, pad_in - fan_in), (0, pad_out - fan_out)))
        b = jnp.pad(b, ((0, 0), (0, pad_out - fan_out)))
        return w.astype(jnp.bfloat16), b

    w1, b1 = linear(ks[0], ks[1], state_size, hidden_size, sp, hp)
    w2, b2 = linear(ks[2], ks[3], hidden_size, hidden_size, hp, hp)
    w3, b3 = linear(ks[4], ks[5], hidden_size, action_size, hp, ap)
    return {"w1": w1, "b1": b1, "w2": w2, "b2": b2, "w3": w3, "b3": b3,
            "state_size": state_size, "action_size": action_size,
            "hidden_size": hidden_size}


def _reference(x, p, action_size):
    """Plain-JAX mirror of the kernel math (bf16 operands, f32 accumulate)."""
    sp = p["w1"].shape[0]
    xb = jnp.pad(x, ((0, 0), (0, sp - x.shape[1]))).astype(jnp.bfloat16)
    h1 = jnp.maximum(
        jnp.dot(xb, p["w1"], preferred_element_type=jnp.float32) + p["b1"], 0.0)
    h2 = jnp.maximum(
        jnp.dot(h1.astype(jnp.bfloat16), p["w2"],
                preferred_element_type=jnp.float32) + p["b2"], 0.0)
    out = jnp.dot(h2.astype(jnp.bfloat16), p["w3"],
                  preferred_element_type=jnp.float32) + p["b3"]
    return out[:, :action_size]


if __name__ == "__main__":
    # Banana env implies state_size=37, action_size=4; hidden_size=24 per module default.
    state_size, action_size, hidden_size = 37, 4, 24

    key = jax.random.PRNGKey(0)
    k_params, k_x = jax.random.split(key)

    params = init_qnetwork_params(k_params, state_size, action_size, hidden_size)

    ok = True
    # act-time (B=1), small replay batch, ragged batch (padding-overshoot fix),
    # and a batch large enough to exercise the 2-tile (dual-TC) grid path.
    for batch in (1, 8, 257, 600):
        x = jax.random.normal(jax.random.fold_in(k_x, batch),
                              (batch, state_size), dtype=jnp.float32)
        q = jax.block_until_ready(qnetwork_forward(x, params))
        expected = _reference(x, params, action_size)
        ok &= (q.shape == (batch, action_size))
        ok &= bool(jnp.allclose(q, expected, atol=1e-2, rtol=1e-2))

    assert ok
    print("KERNEL_OK")
</pallas_src>

<mosaic_0001>
module attributes {stable_mosaic.version = 11 : i64} {
  func.func @qnetwork_kernel(%arg0: i32, %arg1: memref<16x48xf32, #tpu.memory_space<vmem>>, %arg2: memref<48x128xbf16, #tpu.memory_space<vmem>>, %arg3: memref<1x128xf32, #tpu.memory_space<vmem>>, %arg4: memref<128x128xbf16, #tpu.memory_space<vmem>>, %arg5: memref<1x128xf32, #tpu.memory_space<vmem>>, %arg6: memref<128x128xbf16, #tpu.memory_space<vmem>>, %arg7: memref<1x128xf32, #tpu.memory_space<vmem>>, %arg8: memref<16x128xf32, #tpu.memory_space<vmem>>) attributes {dimension_semantics = [#tpu.dimension_semantics<parallel>], iteration_bounds = array<i64: 1>, scalar_prefetch = 0 : i64, scratch_operands = 0 : i64, tpu.core_type = #tpu.core_type<tc>, window_params = [{transform_indices = @transform_0, window_bounds = array<i64: 16, 48>}, {pipeline_mode = #tpu.pipeline_mode<synchronous>, transform_indices = @transform_1, window_bounds = array<i64: 48, 128>}, {pipeline_mode = #tpu.pipeline_mode<synchronous>, transform_indices = @transform_2, window_bounds = array<i64: 1, 128>}, {pipeline_mode = #tpu.pipeline_mode<synchronous>, transform_indices = @transform_3, window_bounds = array<i64: 128, 128>}, {pipeline_mode = #tpu.pipeline_mode<synchronous>, transform_indices = @transform_4, window_bounds = array<i64: 1, 128>}, {pipeline_mode = #tpu.pipeline_mode<synchronous>, transform_indices = @transform_5, window_bounds = array<i64: 128, 128>}, {pipeline_mode = #tpu.pipeline_mode<synchronous>, transform_indices = @transform_6, window_bounds = array<i64: 1, 128>}, {transform_indices = @transform_7, window_bounds = array<i64: 16, 128>}]} {
    %c0 = arith.constant 0 : index
    %c0_0 = arith.constant 0 : index
    %0 = vector.load %arg1[%c0, %c0_0] : memref<16x48xf32, #tpu.memory_space<vmem>>, vector<16x48xf32>
    %1 = arith.truncf %0 : vector<16x48xf32> to vector<16x48xbf16>
    %c0_1 = arith.constant 0 : index
    %c0_2 = arith.constant 0 : index
    %2 = vector.load %arg2[%c0_1, %c0_2] : memref<48x128xbf16, #tpu.memory_space<vmem>>, vector<48x128xbf16>
    %cst = arith.constant dense<0.000000e+00> : vector<16x128xf32>
    %3 = tpu.matmul %1, %2, %cst {dimension_numbers = #tpu.dot_dimension_numbers<[1], [0], [0], [1], [0, 0, 1, 1], [], []>} : vector<16x48xbf16>, vector<48x128xbf16>, vector<16x128xf32> -> vector<16x128xf32>
    %c0_3 = arith.constant 0 : index
    %c0_4 = arith.constant 0 : index
    %4 = vector.load %arg3[%c0_3, %c0_4] : memref<1x128xf32, #tpu.memory_space<vmem>>, vector<1x128xf32>
    %5 = vector.broadcast %4 : vector<1x128xf32> to vector<16x128xf32>
    %6 = arith.addf %3, %5 : vector<16x128xf32>
    %cst_5 = arith.constant 0.000000e+00 : f32
    %7 = vector.broadcast %cst_5 : f32 to vector<16x128xf32>
    %8 = arith.maximumf %6, %7 : vector<16x128xf32>
    %9 = arith.truncf %8 : vector<16x128xf32> to vector<16x128xbf16>
    %c0_6 = arith.constant 0 : index
    %c0_7 = arith.constant 0 : index
    %10 = vector.load %arg4[%c0_6, %c0_7] : memref<128x128xbf16, #tpu.memory_space<vmem>>, vector<128x128xbf16>
    %cst_8 = arith.constant dense<0.000000e+00> : vector<16x128xf32>
    %11 = tpu.matmul %9, %10, %cst_8 {dimension_numbers = #tpu.dot_dimension_numbers<[1], [0], [0], [1], [0, 0, 1, 1], [], []>} : vector<16x128xbf16>, vector<128x128xbf16>, vector<16x128xf32> -> vector<16x128xf32>
    %c0_9 = arith.constant 0 : index
    %c0_10 = arith.constant 0 : index
    %12 = vector.load %arg5[%c0_9, %c0_10] : memref<1x128xf32, #tpu.memory_space<vmem>>, vector<1x128xf32>
    %13 = vector.broadcast %12 : vector<1x128xf32> to vector<16x128xf32>
    %14 = arith.addf %11, %13 : vector<16x128xf32>
    %cst_11 = arith.constant 0.000000e+00 : f32
    %15 = vector.broadcast %cst_11 : f32 to vector<16x128xf32>
    %16 = arith.maximumf %14, %15 : vector<16x128xf32>
    %17 = arith.truncf %16 : vector<16x128xf32> to vector<16x128xbf16>
    %c0_12 = arith.constant 0 : index
    %c0_13 = arith.constant 0 : index
    %18 = vector.load %arg6[%c0_12, %c0_13] : memref<128x128xbf16, #tpu.memory_space<vmem>>, vector<128x128xbf16>
    %cst_14 = arith.constant dense<0.000000e+00> : vector<16x128xf32>
    %19 = tpu.matmul %17, %18, %cst_14 {dimension_numbers = #tpu.dot_dimension_numbers<[1], [0], [0], [1], [0, 0, 1, 1], [], []>} : vector<16x128xbf16>, vector<128x128xbf16>, vector<16x128xf32> -> vector<16x128xf32>
    %c0_15 = arith.constant 0 : index
    %c0_16 = arith.constant 0 : index
    %20 = vector.load %arg7[%c0_15, %c0_16] : memref<1x128xf32, #tpu.memory_space<vmem>>, vector<1x128xf32>
    %21 = vector.broadcast %20 : vector<1x128xf32> to vector<16x128xf32>
    %22 = arith.addf %19, %21 : vector<16x128xf32>
    %c0_17 = arith.constant 0 : index
    %c0_18 = arith.constant 0 : index
    %23 = vector.load %arg8[%c0_17, %c0_18] : memref<16x128xf32, #tpu.memory_space<vmem>>, vector<16x128xf32>
    tpu.vector_store %arg8[%c0_17, %c0_18], %22 {strides = array<i32>} : memref<16x128xf32, #tpu.memory_space<vmem>>, vector<16x128xf32>,
    return
  }
  func.func @transform_0(%arg0: i32) -> (i32, i32) {
    %c0_i32 = arith.constant 0 : i32
    %c0_i32_0 = arith.constant 0 : i32
    return %arg0, %c0_i32 : i32, i32
  }
  func.func @transform_1(%arg0: i32) -> (i32, i32) {
    %c0_i32 = arith.constant 0 : i32
    %c0_i32_0 = arith.constant 0 : i32
    %c0_i32_1 = arith.constant 0 : i32
    return %c0_i32, %c0_i32_0 : i32, i32
  }
  func.func @transform_2(%arg0: i32) -> (i32, i32) {
    %c0_i32 = arith.constant 0 : i32
    %c0_i32_0 = arith.constant 0 : i32
    %c0_i32_1 = arith.constant 0 : i32
    return %c0_i32, %c0_i32_0 : i32, i32
  }
  func.func @transform_3(%arg0: i32) -> (i32, i32) {
    %c0_i32 = arith.constant 0 : i32
    %c0_i32_0 = arith.constant 0 : i32
    %c0_i32_1 = arith.constant 0 : i32
    return %c0_i32, %c0_i32_0 : i32, i32
  }
  func.func @transform_4(%arg0: i32) -> (i32, i32) {
    %c0_i32 = arith.constant 0 : i32
    %c0_i32_0 = arith.constant 0 : i32
    %c0_i32_1 = arith.constant 0 : i32
    return %c0_i32, %c0_i32_0 : i32, i32
  }
  func.func @transform_5(%arg0: i32) -> (i32, i32) {
    %c0_i32 = arith.constant 0 : i32
    %c0_i32_0 = arith.constant 0 : i32
    %c0_i32_1 = arith.constant 0 : i32
    return %c0_i32, %c0_i32_0 : i32, i32
  }
  func.func @transform_6(%arg0: i32) -> (i32, i32) {
    %c0_i32 = arith.constant 0 : i32
    %c0_i32_0 = arith.constant 0 : i32
    %c0_i32_1 = arith.constant 0 : i32
    return %c0_i32, %c0_i32_0 : i32, i32
  }
  func.func @transform_7(%arg0: i32) -> (i32, i32) {
    %c0_i32 = arith.constant 0 : i32
    %c0_i32_0 = arith.constant 0 : i32
    return %arg0, %c0_i32 : i32, i32
  }
}

</mosaic_0001>

<bundles_post_ra>
// kernel: tpu_custom_call.1
= control target key start
LH: loop header
LB: loop body
LE: loop exit
PB: predicated region body
PF: predicated region fallthrough
CT: control target
= control target key end

     0   :  { %12 = vsyncpa [#allocation3], 0  ;;  %s648_s0 = inlined_call_operand.hbm [shape: f32[16,48], index: 0, kind: input, shape index: {}]   ;;  %s649_s1 = inlined_call_operand.hbm [shape: bf16[48,128], index: 1, kind: input, shape index: {}]   ;;  %s650_s2 = inlined_call_operand.vmem [shape: f32[1,128], index: 2, kind: input, shape index: {}]   ;;  %s651_s3 = inlined_call_operand.hbm [shape: bf16[128,128], index: 3, kind: input, shape index: {}]   ;;  %s652_s4 = inlined_call_operand.vmem [shape: f32[1,128], index: 4, kind: input, shape index: {}]   ;;  %s653_s5 = inlined_call_operand.hbm [shape: bf16[128,128], index: 5, kind: input, shape index: {}]   ;;  %s654_s6 = inlined_call_operand.vmem [shape: f32[1,128], index: 6, kind: input, shape index: {}]   ;;  %s655_s7 = inlined_call_operand.hbm [shape: f32[16,128], index: 7, kind: output, shape index: {}]  }
   0x1   :  { %13 = vsyncpa [#allocation6], 0 }
   0x2   :  { %14 = vsyncpa [#allocation9], 0  ;;  %s33_s26 = sshll.u32 %s649_s1, 4  ;;  %s34_s26 = int_to_ptr.hbm [resolvable:$true] %s33_s26 }
   0x3   :  { %15 = vsyncpa [#allocation4], 0  ;;  %s569_s27 = smov [#allocation5]   ;;  %s20_s8 = sshll.u32 %s648_s0, 4  ;;  %s21_s8 = int_to_ptr.hbm [resolvable:$true] %s20_s8 }
   0x4   :  { %s35_s28 = sshll.u32 %s569_s27, 4  ;;  %s570_s9 = smov 64   ;;  %s36_s28 = int_to_ptr.vmem [resolvable:$true] %s35_s28 }
   0x5   :  { %s571_s10 = smov 4   ;;  %s572_s11 = smov [#allocation2]  }
   0x6   :  { %41 = dma.hbm_to_vmem [thread:$0]  %s34_s26, 384, %s36_s28, [#allocation6], %s570_s9, %s570_s9, %s571_s10  }
   0x7   :  { %s22_s12 = sshll.u32 %s572_s11, 4  ;;  %s573_s13 = smov 128   ;;  %s23_s12 = int_to_ptr.vmem [resolvable:$true] %s22_s12 }
   0x8   :  { %s574_s14 = smov 8   ;;  %s48_s16 = sshll.u32 %s651_s3, 4  ;;  %s49_s16 = int_to_ptr.hbm [resolvable:$true] %s48_s16 }
   0x9   :  { %28 = dma.hbm_to_vmem [thread:$0]  %s21_s8, 256, %s23_s12, [#allocation3], %s573_s13, %s573_s13, %s574_s14  }
   0xa   :  { %s575_s17 = smov [#allocation7]   ;;  %s63_s20 = sshll.u32 %s653_s5, 4  ;;  %s64_s20 = int_to_ptr.hbm [resolvable:$true] %s63_s20 }
   0xb   :  { %s50_s0 = sshll.u32 %s575_s17, 4  ;;  %s576_s21 = smov [#allocation8]   ;;  %s51_s0 = int_to_ptr.vmem [resolvable:$true] %s50_s0 }
   0xc   :  { %56 = dma.hbm_to_vmem [thread:$0]  %s49_s16, 1024, %s51_s0, [#allocation6], %s570_s9, %s570_s9, %s571_s10  }
   0xd   :  { %s65_s22 = sshll.u32 %s576_s21, 4  ;;  %s66_s22 = int_to_ptr.vmem [resolvable:$true] %s65_s22 }
   0xe   :  { %71 = dma.hbm_to_vmem [thread:$0]  %s64_s20, 1024, %s66_s22, [#allocation9], %s570_s9, %s570_s9, %s571_s10  }
   0xf   :  { %561 = dma.done.wait [#allocation3], 256  }
  0x10   :  { %562 = vsyncadd [#allocation3], 4294967040 }
  0x11   :  { %563 = dma.done.wait [#allocation6], 1408  }
  0x12   :  { %564 = vsyncadd [#allocation6], 4294965888 }
  0x13   :  { %565 = dma.done.wait [#allocation9], 1024  }
  0x14   :  { %566 = vsyncadd [#allocation9], 4294966272  ;;  %v412_v0 = vld [vmem:[#allocation5 + $0x10] sm:$0xff]  ;;  %v411_v2 = vld [vmem:[#allocation5 + $0x8] sm:$0xff]  ;;  %vm122_vm0 = vcmask 392192   ;;  %s577_s26 = smov [#allocation10]  }
  0x15   :  { %v420_v1 = vld [vmem:[#allocation7 + $0x38] sm:$0xff]  ;;  %131 = vmatpush.bf16.msra.mxu0 %v412_v0  ;;  %v419_v3 = vld [vmem:[#allocation7 + $0x30] sm:$0xff]  ;;  %v410_v4 = vld [vmem:[#allocation5] sm:$0xff]  ;;  %s316_s27 = sshll.u32 %s577_s26, 4  ;;  %s317_s27 = int_to_ptr.vmem [resolvable:$true] %s316_s27 }
  0x16   :  { %211 = vmatpush.bf16.msra.mxu1 %v420_v1  ;;  %v91_v5 = vld [vmem:[#allocation2] sm:$0xff]  ;;  %v92_v6 = vld [vmem:[#allocation2 + $0x8] sm:$0xff]  ;;  %v418_v7 = vld [vmem:[#allocation7 + $0x28] sm:$0xff] }
  0x17   :  { %v93_v8 = vpack.c.bf16 %v92_v6, %v91_v5  ;;  %v417_v9 = vld [vmem:[#allocation7 + $0x20] sm:$0xff]  ;;  %v416_v10 = vld [vmem:[#allocation7 + $0x18] sm:$0xff]  ;;  %v415_v11 = vld [vmem:[#allocation7 + $0x10] sm:$0xff] }
  0x18   :  { %v414_v12 = vld [vmem:[#allocation7 + $0x8] sm:$0xff]  ;;  %v413_v13 = vld [vmem:[#allocation7] sm:$0xff]  ;;  %v428_v14 = vld [vmem:[#allocation8 + $0x38] sm:$0xff] }
  0x19   :  { %132 = vmatpush.bf16.msra.mxu0 %v411_v2  ;;  %296 = vmatpush.bf16.msra.mxu2 %v428_v14  ;;  %v427_v15 = vld [vmem:[#allocation8 + $0x30] sm:$0xff]  ;;  %v426_v16 = vld [vmem:[#allocation8 + $0x28] sm:$0xff]  ;;  %v425_v17 = vld [vmem:[#allocation8 + $0x20] sm:$0xff] }
  0x1a   :  { %212 = vmatpush.bf16.msra.mxu1 %v419_v3  ;;  %v438_v19 = vld [vmem:[%s650_s2] ss:$0 sm:$0xff]  ;;  %v423_v27 = vld [vmem:[#allocation8 + $0x10] sm:$0xff]  ;;  %v422_v28 = vld [vmem:[#allocation8 + $0x8] sm:$0xff] }
  0x1b   :  { %v424_v26 = vld [vmem:[#allocation8 + $0x18] sm:$0xff]  ;;  %v421_v29 = vld [vmem:[#allocation8] sm:$0xff] }
  0x1c   :  { %v439_v31 = vld [vmem:[%s652_s4] ss:$0 sm:$0xff]  ;;  %s318_s4 = sshll.u32 %s655_s7, 4  ;;  %s319_s4 = int_to_ptr.hbm [resolvable:$true] %s318_s4 }
  0x1d   :  { %133 = vmatpush.bf16.msra.mxu0 %v410_v4  ;;  %297 = vmatpush.bf16.msra.mxu2 %v427_v15  ;;  %v440_v38 = vld [vmem:[%s654_s6] ss:$0 sm:$0xff] }
  0x1e   :  { %213 = vmatpush.bf16.msra.mxu1 %v418_v7 }
  0x20   :  { %345 = vmatmul.msk.bf16.vlgmr.msra.gmra.mxu0 %vm122_vm0, %v93_v8 }
  0x21   :  { %298 = vmatpush.bf16.msra.mxu2 %v426_v16 }
  0x22   :  { %214 = vmatpush.bf16.msra.mxu1 %v417_v9 }
  0x25   :  { %299 = vmatpush.bf16.msra.mxu2 %v425_v17 }
  0x26   :  { %215 = vmatpush.bf16.msra.mxu1 %v416_v10 }
  0x29   :  { %300 = vmatpush.bf16.msra.mxu2 %v424_v26 }
  0x2a   :  { %216 = vmatpush.bf16.msra.mxu1 %v415_v11 }
  0x2d   :  { %301 = vmatpush.bf16.msra.mxu2 %v423_v27 }
  0x2e   :  { %217 = vmatpush.bf16.msra.mxu1 %v414_v12 }
  0x31   :  { %302 = vmatpush.bf16.msra.mxu2 %v422_v28 }
  0x32   :  { %218 = vmatpush.bf16.msra.mxu1 %v413_v13 }
  0x35   :  { %303 = vmatpush.bf16.msra.mxu2 %v421_v29 }
  0x9d   :  { %v135_v18 = vpop.f32.mrf.mxu0 }
  0x9e   :  { %v136_v20 = vadd.f32 %v438_v19, %v135_v18 }
  0xa0   :  { %v140_v23 = vmax.f32 %v136_v20, 0.0 }
  0xa5   :  { %v137_v21 = vpop.f32.mrf.mxu0 }
  0xa6   :  { %v138_v22 = vadd.f32 %v438_v19, %v137_v21 }
  0xa8   :  { %v141_v24 = vmax.f32 %v138_v22, 0.0 }
  0xaa   :  { %v142_v25 = vpack.c.bf16 %v141_v24, %v140_v23 }
  0xac   :  { %219 = vmatmul.bf16.vlgmr.msra.gmra.mxu1 %v142_v25 }
 0x129   :  { %v220_v30 = vpop.f32.mrf.mxu1 }
 0x12a   :  { %v221_v32 = vadd.f32 %v439_v31, %v220_v30 }
 0x12c   :  { %v225_v35 = vmax.f32 %v221_v32, 0.0 }
 0x131   :  { %v222_v33 = vpop.f32.mrf.mxu1 }
 0x132   :  { %v223_v34 = vadd.f32 %v439_v31, %v222_v33 }
 0x134   :  { %v226_v36 = vmax.f32 %v223_v34, 0.0 }
 0x136   :  { %v227_v37 = vpack.c.bf16 %v226_v36, %v225_v35 }
 0x138   :  { %304 = vmatmul.bf16.vlgmr.msra.gmra.mxu2 %v227_v37 }
 0x1bb   :  { %v305_v39 = vpop.f32.mrf.mxu2 }
 0x1bc   :  { %v306_v40 = vadd.f32 %v440_v38, %v305_v39 }
 0x1be   :  { %310 = vst [vmem:[#allocation10] sm:$0xff] %v306_v40 }
 0x1c3   :  { %v307_v41 = vpop.f32.mrf.mxu2 }
 0x1c4   :  { %v308_v42 = vadd.f32 %v440_v38, %v307_v41 }
 0x1c6   :  { %311 = vst [vmem:[#allocation10 + $0x8] sm:$0xff] %v308_v42 }
 0x1c7   :  { %324 = dma.vmem_to_hbm [thread:$0]  %s317_s27, 256, %s319_s4, [#allocation4], %s573_s13, %s573_s13, %s574_s14  }
 0x1c8   :  { %567 = dma.done.wait [#allocation4], 256  }
 0x1c9   :  { %568 = vsyncadd [#allocation4], 4294967040 }
 0x1ca   :  { %329 = vsyncpa [#allocation3], 1 }
 0x1cb   :  { %330 = vsyncpa [#allocation6], 1 }
 0x1cc   :  { %331 = vsyncpa [#allocation9], 1 }
 0x1cd   :  { %332 = vsyncpa [#allocation4], 1 }

</bundles_post_ra>
